<compile_context>
chip_gen: v6e
topology: v6e:2x2x1
jax: 0.10.0
libtpu: 0.0.40
codegen_flags: <defaults>
</compile_context>

<pallas_src>
import functools

import jax
import jax.numpy as jnp
import numpy as np
from jax.experimental import pallas as pl
from jax.experimental.pallas import tpu as pltpu


_VMEM_LIMIT_BYTES = 48 * 1024 * 1024      # explicit scoped-VMEM limit (safe on v7x)
_FUSED_VMEM_BUDGET = 28 * 1024 * 1024     # budget for fused per-image blocks
_BLOCK_VMEM_BUDGET = 24 * 1024 * 1024     # budget for streaming-fallback blocks


# --------------------------------------------------------------------------- #
# Fused single-pass kernel (pool + MLP + scale), one image per grid step.
# --------------------------------------------------------------------------- #
def _fused_kernel(x_ref, w1t_ref, b1_ref, w2_ref, b2_ref, o_ref, *, inv_hw):
    x = x_ref[0]                                                    # (C, HW)

    # Global average pool: lane (XLU) reduction, f32 accumulation.
    pooled = jnp.sum(x.astype(jnp.float32), axis=1, keepdims=True) * inv_hw  # (C, 1)

    # conv1x1 (C -> Cr) + ReLU:  h[r] = sum_c w1[r, c] * pooled[c] + b1[r]
    # w1t is (C, Cr): sublane reduction over C, no transpose, no MXU.
    h = jnp.maximum(
        jnp.sum(w1t_ref[...] * pooled, axis=0, keepdims=True) + b1_ref[...],
        0.0)                                                        # (1, Cr)

    # conv1x1 (Cr -> C) + sigmoid: s[c] = sum_r w2[c, r] * h[r] + b2[c]
    # w2 is (C, Cr): lane reduction over Cr.
    s = jax.nn.sigmoid(
        jnp.sum(w2_ref[...] * h, axis=1, keepdims=True) + b2_ref[...])  # (C, 1)

    # Rescale: sublane vector broadcast over the spatial (lane) axis.
    o_ref[0] = x * s.astype(x.dtype)


# --------------------------------------------------------------------------- #
# Streaming fallback kernels (only for images too large to fit VMEM).
# --------------------------------------------------------------------------- #
def _pool_kernel(x_ref, sum_ref, acc_ref):
    """Accumulate per-channel spatial sums.  x block: (1, C, T) -> (1, C, 1)."""
    t = pl.program_id(1)

    @pl.when(t == 0)
    def _():
        acc_ref[...] = jnp.zeros_like(acc_ref)

    x = x_ref[0]                                                    # (C, T)
    acc_ref[...] += jnp.sum(x.astype(jnp.float32), axis=1, keepdims=True)

    @pl.when(t == pl.num_programs(1) - 1)
    def _():
        sum_ref[0] = acc_ref[...]


def _scale_kernel(x_ref, s_ref, o_ref):
    """out = x * s, s broadcast over the spatial (lane) axis."""
    o_ref[0] = x_ref[0] * s_ref[0]                                  # (C, T) * (C, 1)


def _pick_hw_tile(HW, C, itemsize):
    """Largest HW tile (multiple of 128, dividing HW) within the VMEM budget."""
    max_t = max(_BLOCK_VMEM_BUDGET // (4 * C * itemsize), 1)
    if HW <= max_t:
        return HW
    t = (min(max_t, HW) // 128) * 128
    while t >= 128:
        if HW % t == 0:
            return t
        t -= 128
    # TODO(synk): pad HW to a multiple of 128 in the wrapper for ragged spatial
    # sizes instead of falling back to a whole-image block.
    return HW


# --------------------------------------------------------------------------- #
# Wrapper
# --------------------------------------------------------------------------- #
def channel_attention(x_nchw, w1, b1, w2, b2):
    """SE-style channel attention, NCHW in / NCHW out.

    x_nchw: (N, C, H, W)
    w1: (Cr, C)  squeezed Conv2d(C, Cr, 1).weight     b1: (Cr,)
    w2: (C, Cr)  squeezed Conv2d(Cr, C, 1).weight     b2: (C,)
    """
    N, C, H, W = x_nchw.shape
    Cr = w1.shape[0]
    HW = H * W
    itemsize = int(jnp.dtype(x_nchw.dtype).itemsize)

    x = x_nchw.reshape(N, C, HW)                  # free reshape, no transpose

    # VMEM needed by the fused kernel: double-buffered in + out blocks, plus a
    # transient f32 copy of the tile when the input is sub-32-bit.
    fused_vmem = 4 * C * HW * itemsize + (C * HW * 4 if itemsize < 4 else 0)

    if fused_vmem <= _FUSED_VMEM_BUDGET:
        # ---- fused single pass: read x once, write out once ----------------
        w1t = jnp.asarray(w1, jnp.float32).T                       # (C, Cr)
        b1r = jnp.asarray(b1, jnp.float32).reshape(1, Cr)
        w2r = jnp.asarray(w2, jnp.float32)                         # (C, Cr)
        b2r = jnp.asarray(b2, jnp.float32).reshape(C, 1)

        out = pl.pallas_call(
            functools.partial(_fused_kernel, inv_hw=1.0 / HW),
            out_shape=jax.ShapeDtypeStruct((N, C, HW), x.dtype),
            grid=(N,),
            in_specs=[
                pl.BlockSpec((1, C, HW), lambda n: (n, 0, 0)),
                pl.BlockSpec((C, Cr), lambda n: (0, 0)),
                pl.BlockSpec((1, Cr), lambda n: (0, 0)),
                pl.BlockSpec((C, Cr), lambda n: (0, 0)),
                pl.BlockSpec((C, 1), lambda n: (0, 0)),
            ],
            out_specs=pl.BlockSpec((1, C, HW), lambda n: (n, 0, 0)),
            compiler_params=pltpu.CompilerParams(
                dimension_semantics=("parallel",),
                vmem_limit_bytes=_VMEM_LIMIT_BYTES),
            cost_estimate=pl.CostEstimate(
                flops=int(N * (2 * C * HW + 4 * C * Cr)),
                transcendentals=int(N * C),
                bytes_accessed=int(2 * N * C * HW * itemsize + 4 * C * (2 * Cr + 2))),
        )(x, w1t, b1r, w2r, b2r)
        return out.reshape(N, C, H, W)

    # ---- fallback: two streaming passes for images that don't fit VMEM ------
    T = _pick_hw_tile(HW, C, itemsize)
    num_t = HW // T

    sums = pl.pallas_call(
        _pool_kernel,
        out_shape=jax.ShapeDtypeStruct((N, C, 1), jnp.float32),
        grid=(N, num_t),
        in_specs=[pl.BlockSpec((1, C, T), lambda n, t: (n, 0, t))],
        out_specs=pl.BlockSpec((1, C, 1), lambda n, t: (n, 0, 0)),
        scratch_shapes=[pltpu.VMEM((C, 1), jnp.float32)],
        compiler_params=pltpu.CompilerParams(
            dimension_semantics=("parallel", "arbitrary"),
            vmem_limit_bytes=_VMEM_LIMIT_BYTES),
        cost_estimate=pl.CostEstimate(
            flops=int(N * HW * C),
            transcendentals=0,
            bytes_accessed=int(N * HW * C * itemsize + N * C * 4)),
    )(x)

    # tiny squeeze/excite MLP, batched over N (negligible FLOPs, plain JAX)
    pooled = sums[:, :, 0] * (1.0 / HW)                             # (N, C) f32
    h = jnp.maximum(pooled @ jnp.asarray(w1, jnp.float32).T + b1[None, :], 0.0)
    s = jax.nn.sigmoid(h @ jnp.asarray(w2, jnp.float32).T + b2[None, :])
    s = s.astype(x.dtype).reshape(N, C, 1)

    out = pl.pallas_call(
        _scale_kernel,
        out_shape=jax.ShapeDtypeStruct((N, C, HW), x.dtype),
        grid=(N, num_t),
        in_specs=[pl.BlockSpec((1, C, T), lambda n, t: (n, 0, t)),
                  pl.BlockSpec((1, C, 1), lambda n, t: (n, 0, 0))],
        out_specs=pl.BlockSpec((1, C, T), lambda n, t: (n, 0, t)),
        compiler_params=pltpu.CompilerParams(
            dimension_semantics=("parallel", "parallel"),
            vmem_limit_bytes=_VMEM_LIMIT_BYTES),
        cost_estimate=pl.CostEstimate(
            flops=int(N * HW * C),
            transcendentals=0,
            bytes_accessed=int(2 * N * HW * C * itemsize)),
    )(x, s)

    return out.reshape(N, C, H, W)


def _reference(x_nchw, w1, b1, w2, b2):
    """Pure-JAX reference matching the PyTorch module (native conv-weight layout)."""
    pooled = jnp.mean(x_nchw, axis=(2, 3))                          # (N, C)
    h = jnp.maximum(pooled @ w1.T + b1, 0.0)                        # (N, Cr)
    s = jax.nn.sigmoid(h @ w2.T + b2)                               # (N, C)
    return x_nchw * s[:, :, None, None]


if __name__ == "__main__":
    # small shapes consistent with the module (channel divisible by reduction)
    N, C, H, W = 2, 32, 16, 16
    reduction = 4
    Cr = C // reduction

    key = jax.random.PRNGKey(0)
    kx, k1, kb1, k2, kb2 = jax.random.split(key, 5)

    x = jax.random.normal(kx, (N, C, H, W), dtype=jnp.float32)

    # weights in native (squeezed) PyTorch Conv2d layout:
    #   Conv2d(C, Cr, 1).weight -> (Cr, C);  Conv2d(Cr, C, 1).weight -> (C, Cr)
    w1 = 0.1 * jax.random.normal(k1, (Cr, C), dtype=jnp.float32)
    b1 = 0.1 * jax.random.normal(kb1, (Cr,), dtype=jnp.float32)
    w2 = 0.1 * jax.random.normal(k2, (C, Cr), dtype=jnp.float32)
    b2 = 0.1 * jax.random.normal(kb2, (C,), dtype=jnp.float32)

    out = channel_attention(x, w1, b1, w2, b2)
    out = jax.block_until_ready(out)

    ref = jax.block_until_ready(_reference(x, w1, b1, w2, b2))
    np.testing.assert_allclose(np.asarray(out), np.asarray(ref),
                               rtol=1e-5, atol=1e-5)

    print("KERNEL_OK")
</pallas_src>

<mosaic_0001>
module attributes {stable_mosaic.version = 11 : i64} {
  func.func @_fused_kernel(%arg0: i32, %arg1: memref<1x32x256xf32, #tpu.memory_space<vmem>>, %arg2: memref<32x8xf32, #tpu.memory_space<vmem>>, %arg3: memref<1x8xf32, #tpu.memory_space<vmem>>, %arg4: memref<32x8xf32, #tpu.memory_space<vmem>>, %arg5: memref<32x1xf32, #tpu.memory_space<vmem>>, %arg6: memref<1x32x256xf32, #tpu.memory_space<vmem>>) attributes {dimension_semantics = [#tpu.dimension_semantics<parallel>], iteration_bounds = array<i64: 2>, scalar_prefetch = 0 : i64, scratch_operands = 0 : i64, tpu.core_type = #tpu.core_type<tc>, window_params = [{transform_indices = @transform_0, window_bounds = array<i64: 1, 32, 256>}, {pipeline_mode = #tpu.pipeline_mode<synchronous>, transform_indices = @transform_1, window_bounds = array<i64: 32, 8>}, {pipeline_mode = #tpu.pipeline_mode<synchronous>, transform_indices = @transform_2, window_bounds = array<i64: 1, 8>}, {pipeline_mode = #tpu.pipeline_mode<synchronous>, transform_indices = @transform_3, window_bounds = array<i64: 32, 8>}, {pipeline_mode = #tpu.pipeline_mode<synchronous>, transform_indices = @transform_4, window_bounds = array<i64: 32, 1>}, {transform_indices = @transform_5, window_bounds = array<i64: 1, 32, 256>}]} {
    %c0 = arith.constant 0 : index
    %c0_0 = arith.constant 0 : index
    %c0_1 = arith.constant 0 : index
    %0 = vector.load %arg1[%c0, %c0_0, %c0_1] : memref<1x32x256xf32, #tpu.memory_space<vmem>>, vector<1x32x256xf32>
    %1 = vector.shape_cast %0 : vector<1x32x256xf32> to vector<32x256xf32>
    %cst = arith.constant dense<0.000000e+00> : vector<32xf32>
    %2 = vector.multi_reduction <add>, %1, %cst [1] : vector<32x256xf32> to vector<32xf32>
    %3 = vector.shape_cast %2 : vector<32xf32> to vector<32x1xf32>
    %cst_2 = arith.constant 3.906250e-03 : f32
    %4 = vector.broadcast %cst_2 : f32 to vector<32x1xf32>
    %5 = arith.mulf %3, %4 : vector<32x1xf32>
    %c0_3 = arith.constant 0 : index
    %c0_4 = arith.constant 0 : index
    %6 = vector.load %arg2[%c0_3, %c0_4] : memref<32x8xf32, #tpu.memory_space<vmem>>, vector<32x8xf32>
    %7 = vector.broadcast %5 : vector<32x1xf32> to vector<32x8xf32>
    %8 = arith.mulf %6, %7 : vector<32x8xf32>
    %cst_5 = arith.constant dense<0.000000e+00> : vector<8xf32>
    %9 = vector.multi_reduction <add>, %8, %cst_5 [0] : vector<32x8xf32> to vector<8xf32>
    %10 = vector.shape_cast %9 : vector<8xf32> to vector<1x8xf32>
    %c0_6 = arith.constant 0 : index
    %c0_7 = arith.constant 0 : index
    %11 = vector.load %arg3[%c0_6, %c0_7] : memref<1x8xf32, #tpu.memory_space<vmem>>, vector<1x8xf32>
    %12 = arith.addf %10, %11 : vector<1x8xf32>
    %cst_8 = arith.constant 0.000000e+00 : f32
    %13 = vector.broadcast %cst_8 : f32 to vector<1x8xf32>
    %14 = arith.maximumf %12, %13 : vector<1x8xf32>
    %c0_9 = arith.constant 0 : index
    %c0_10 = arith.constant 0 : index
    %15 = vector.load %arg4[%c0_9, %c0_10] : memref<32x8xf32, #tpu.memory_space<vmem>>, vector<32x8xf32>
    %16 = vector.broadcast %14 : vector<1x8xf32> to vector<32x8xf32>
    %17 = arith.mulf %15, %16 : vector<32x8xf32>
    %cst_11 = arith.constant dense<0.000000e+00> : vector<32xf32>
    %18 = vector.multi_reduction <add>, %17, %cst_11 [1] : vector<32x8xf32> to vector<32xf32>
    %19 = vector.shape_cast %18 : vector<32xf32> to vector<32x1xf32>
    %c0_12 = arith.constant 0 : index
    %c0_13 = arith.constant 0 : index
    %20 = vector.load %arg5[%c0_12, %c0_13] : memref<32x1xf32, #tpu.memory_space<vmem>>, vector<32x1xf32>
    %21 = arith.addf %19, %20 : vector<32x1xf32>
    %22 = arith.negf %21 : vector<32x1xf32>
    %23 = math.exp %22 : vector<32x1xf32>
    %cst_14 = arith.constant 1.000000e+00 : f32
    %24 = vector.broadcast %cst_14 : f32 to vector<32x1xf32>
    %25 = arith.addf %24, %23 : vector<32x1xf32>
    %26 = arith.divf %24, %25 : vector<32x1xf32>
    %27 = vector.broadcast %26 : vector<32x1xf32> to vector<32x256xf32>
    %28 = arith.mulf %1, %27 : vector<32x256xf32>
    %c0_15 = arith.constant 0 : index
    %c0_16 = arith.constant 0 : index
    %c0_17 = arith.constant 0 : index
    %29 = vector.load %arg6[%c0_15, %c0_16, %c0_17] : memref<1x32x256xf32, #tpu.memory_space<vmem>>, vector<1x32x256xf32>
    %30 = vector.shape_cast %29 : vector<1x32x256xf32> to vector<32x256xf32>
    %31 = vector.shape_cast %28 : vector<32x256xf32> to vector<1x32x256xf32>
    tpu.vector_store %arg6[%c0_15, %c0_16, %c0_17], %31 {strides = array<i32>} : memref<1x32x256xf32, #tpu.memory_space<vmem>>, vector<1x32x256xf32>,
    return
  }
  func.func @transform_0(%arg0: i32) -> (i32, i32, i32) {
    %c0_i32 = arith.constant 0 : i32
    %c0_i32_0 = arith.constant 0 : i32
    %c0_i32_1 = arith.constant 0 : i32
    return %arg0, %c0_i32, %c0_i32_0 : i32, i32, i32
  }
  func.func @transform_1(%arg0: i32) -> (i32, i32) {
    %c0_i32 = arith.constant 0 : i32
    %c0_i32_0 = arith.constant 0 : i32
    %c0_i32_1 = arith.constant 0 : i32
    return %c0_i32, %c0_i32_0 : i32, i32
  }
  func.func @transform_2(%arg0: i32) -> (i32, i32) {
    %c0_i32 = arith.constant 0 : i32
    %c0_i32_0 = arith.constant 0 : i32
    %c0_i32_1 = arith.constant 0 : i32
    return %c0_i32, %c0_i32_0 : i32, i32
  }
  func.func @transform_3(%arg0: i32) -> (i32, i32) {
    %c0_i32 = arith.constant 0 : i32
    %c0_i32_0 = arith.constant 0 : i32
    %c0_i32_1 = arith.constant 0 : i32
    return %c0_i32, %c0_i32_0 : i32, i32
  }
  func.func @transform_4(%arg0: i32) -> (i32, i32) {
    %c0_i32 = arith.constant 0 : i32
    %c0_i32_0 = arith.constant 0 : i32
    %c0_i32_1 = arith.constant 0 : i32
    return %c0_i32, %c0_i32_0 : i32, i32
  }
  func.func @transform_5(%arg0: i32) -> (i32, i32, i32) {
    %c0_i32 = arith.constant 0 : i32
    %c0_i32_0 = arith.constant 0 : i32
    %c0_i32_1 = arith.constant 0 : i32
    return %arg0, %c0_i32, %c0_i32_0 : i32, i32, i32
  }
}

</mosaic_0001>

<bundles_post_ra>
// kernel: tpu_custom_call.1
= control target key start
LH: loop header
LB: loop body
LE: loop exit
PB: predicated region body
PF: predicated region fallthrough
CT: control target
= control target key end

     0   :  { %10 = vsyncpa [#allocation3], 0  ;;  %s928_s0 = inlined_call_operand.hbm [shape: f32[2,32,256], index: 0, kind: input, shape index: {}]   ;;  %s929_s1 = inlined_call_operand.vmem [shape: f32[32,8], index: 1, kind: input, shape index: {}]   ;;  %s930_s2 = inlined_call_operand.vmem [shape: f32[1,8], index: 2, kind: input, shape index: {}]   ;;  %s931_s3 = inlined_call_operand.vmem [shape: f32[32,8], index: 3, kind: input, shape index: {}]   ;;  %s932_s4 = inlined_call_operand.vmem [shape: f32[32,1], index: 4, kind: input, shape index: {}]   ;;  %s933_s5 = inlined_call_operand.hbm [shape: f32[2,32,256], index: 5, kind: output, shape index: {}]  }
   0x1   :  { %12 = vsyncpa [#allocation3 + $0x1], 0 }
   0x2   :  { %13 = vsyncpa [#allocation4], 0 }
   0x3   :  { %15 = vsyncpa [#allocation4 + $0x1], 0  ;;  %s691_s18 = smov 0   ;;  %s693_s19 = smov 0  }
   0x4   :  { %s695_s20 = smov 0   ;;  %s697_s21 = smov 0  }
   0x5 LB: > { %s712_s22 = sadd.s32 4294967295, %s652_s21   ;;  %s471_s23 = sadd.s32 4294967294, %s652_s21   ;;  %s652_s21 = sphi %s697_s21, %s948_s21   ;;  %s648_s20 = sphi %s695_s20, %s947_s20   ;;  %s644_s19 = sphi %s693_s19, %s946_s19   ;;  %s640_s18 = sphi %s691_s18, %s945_s18  }
   0x6   : > { %s716_s24 = sadd.s32 1, %s652_s21   ;;  %s28_s25 = sadd.s32 1, %s648_s20 }
   0x7   : > { %s25_s26 = ssub.s32 %s652_s21, %s716_s24  ;;  %p35_p0 = scmp.ne.s32.totalorder %s648_s20, %s644_s19 }
   0x8   : > { %p26_p1 = scmp.eq.s32.totalorder %s25_s26, 0  ;;  %p36_p2 = scmp.eq.s32.totalorder %s652_s21, 0 }
   0x9   : > { %p41_p3 = scmp.ne.s32.totalorder %s644_s19, %s640_s18  ;;  %p42_p4 = scmp.eq.s32.totalorder %s712_s22, 0 }
   0xa   : > { %s728_s27 = scalar_select %p26_p1, %s648_s20, %s28_s25  }
   0xb   : > { %p730_p5 = por %p36_p2, %p35_p0  ;;  %p734_p6 = por %p42_p4, %p41_p3 }
   0xc   : > { %p149_p7 = scmp.eq.s32.totalorder %s712_s22, 1  ;;  %p155_p8 = scmp.eq.s32.totalorder %s471_s23, 1 }
   0xd   : > { %s937_s29 = scalar_select %p734_p6, 1, 0 }
   0xe   : > { %p503_p10 = scmp.lt.s32.totalorder %s652_s21, 2  ;;  %p741_p11 = por %p149_p7, %p35_p0 }
   0xf   : > { %p745_p12 = por %p155_p8, %p41_p3  ;;  %s187_s7 = sand.u32 1, %s648_s20  }
  0x10   : > { %s938_s30 = scalar_select %p741_p11, 1, 0 }
  0x11   : > { %s939_s6 = scalar_select %p745_p12, 1, 0 }
  0x12   : > { %s489_s8 = sshll.u32 %s652_s21, 10  ;;  %s474_s9 = sshll.u32 %s187_s7, 6 }
  0x13   : > { %s754_s12 = scalar_lea.hbm %s928_s0, %s489_s8  ;;  %s191_s13 = scalar_lea.vmem [#allocation2], %s474_s9 }
  0x14   : > { %s198_s14 = sshll.u32 %s191_s13, 4  ;;  %p758_p13 = pnand %p503_p10, %p730_p5  ;;  %s762_s14 = int_to_ptr.vmem [resolvable:$true] %s198_s14 }
  0x15   : > { %s764_s16 = scalar_lea.sflag [#allocation3], %s187_s7  ;;  %s560_s17 = scalar_lea.hbm %s754_s12, 1024 }
  0x16   : > { %p561_p0 = scmp.ne.s32.totalorder %s754_s12, %s560_s17  ;;  %p562_p1 = pneg %p758_p13 }
  0x17   : > { %s565_s26 = scalar_lea.hbm %s928_s0, 2048  ;;  %p566_p4 = scmp.lt.s32.totalorder %s754_s12, %s928_s0 }
  0x18   : > { %p563_p2 = pnand %p562_p1, %p561_p0  ;;  %p567_p5 = scmp.lt.s32.totalorder %s565_s26, %s560_s17 }
  0x1a   : > { %p564_p3 = pneg %p563_p2  ;;  %p568_p7 = por %p567_p5, %p566_p4 }
  0x1c   : > { %p569_p8 = pnand %p568_p7, %p564_p3 }
  0x1e   : > { %572 = shalt.err (!%p569_p8)
}
  0x1f   : > { %s573_s7 = scalar_lea.vmem %s762_s14, 1024  ;;  %s654_s9 = smov [#allocation2]  }
  0x20   : > { %p574_p10 = scmp.ne.s32.totalorder %s762_s14, %s573_s7  ;;  %s578_s10 = sshll.u32 %s654_s9, 4  ;;  %s579_s10 = int_to_ptr.vmem [resolvable:$false] %s578_s10 }
  0x21   : > { %s580_s11 = scalar_lea.vmem %s579_s10, 2048  ;;  %p581_p2 = scmp.lt.s32.totalorder %s762_s14, %s579_s10 }
  0x22   : > { %p576_p9 = pnand %p574_p10, %p562_p1  ;;  %p582_p12 = scmp.lt.s32.totalorder %s580_s11, %s573_s7 }
  0x24   : > { %p577_p0 = pneg %p576_p9  ;;  %p583_p11 = por %p582_p12, %p581_p2 }
  0x26   : > { %p584_p6 = pnand %p583_p11, %p577_p0 }
  0x28   : > { %587 = shalt.err (!%p584_p6)
}
  0x29   : > { %s655_s13 = smov 256   ;;  %s656_s17 = smov 16  }
  0x2a   : > { %498 = dma.hbm_to_vmem [thread:$0]  (!%p758_p13), %s754_s12, 1024, %s762_s14, %s764_s16, %s655_s13, %s655_s13, %s656_s17  }
  0x2b   : > { %p477_p9 = scmp.ge.s32.totalorder %s652_s21, 1  ;;  %p206_p1 = scmp.lt.s32.totalorder %s652_s21, 3 }
  0x2d   : > { %p207_p3 = pnand %p477_p9, %p206_p1 }
  0x2e   : > { %s788_s23 = sand.u32 (!%p207_p3), 1, %s644_s19   ;;  %p941_p6 = scmp.ne.s32.totalorder (!%p207_p3), %s937_s29, 0 }
  0x2f   : > { %210 = sbr.rel (%p207_p3) target bundleno = 551 (0x227), region = 40  ;;  %s478_s25 = sshll.u32 (!%p207_p3), %s788_s23, 6 }
  0x30   : > { %s213_s26 = scalar_lea.sflag (!%p207_p3), [#allocation3], %s788_s23  ;;  %s216_s28 = scalar_lea.vmem (!%p207_p3), [#allocation2], %s478_s25 }
  0x34   : > { %631 = dma.done.wait (%p941_p6), %s213_s26, 1024  }
  0x35   : > { %633 = vsyncadd (%p941_p6), %s213_s26, 4294966272  ;;  %v798_v0 = vld [vmem:[%s216_s28] sm:$0xff]  ;;  %v800_v1 = vld [vmem:[%s216_s28 + $0x8] sm:$0xff]  ;;  %vm275_vm0 = vcmask 64512   ;;  %v296_v38 = vlaneseq  ;;  %v657_v60 = vmov 0   ;;  %s242_s26 = scalar_lea.vmem [#allocation5], %s478_s25 }
  0x36   : > { %v802_v2 = vld [vmem:[%s216_s28 + $0x20] sm:$0xff]  ;;  %v251_v3 = vadd.f32 %v800_v1, %v798_v0  ;;  %v806_v4 = vld [vmem:[%s216_s28 + $0x28] sm:$0xff]  ;;  %v808_v5 = vld [vmem:[%s216_s28 + $0x10] sm:$0xff]  ;;  %543 = vset.pattern.permute.xlu1 %v657_v60  ;;  %542 = vset.pattern.permute.xlu0 %v657_v60  ;;  %s490_s29 = sshll.u32 %s712_s22, 10  ;;  %s385_s22 = scalar_lea.sflag [#allocation4], %s788_s23 }
  0x37   : > { %v810_v6 = vld [vmem:[%s216_s28 + $0x18] sm:$0xff]  ;;  %v257_v7 = vadd.f32 %v806_v4, %v802_v2  ;;  %v814_v8 = vld [vmem:[%s216_s28 + $0x30] sm:$0xff]  ;;  %v267_v15 = vld [vmem:[%s929_s1] sm:$0xff]  ;;  %v297_v41 = vshrl.u32 %v296_v38, 7  ;;  %s883_s14 = scalar_lea.hbm %s933_s5, %s490_s29  ;;  %p942_p12 = scmp.ne.s32.totalorder %s938_s30, 0 }
  0x38   : > { %v816_v9 = vld [vmem:[%s216_s28 + $0x38] sm:$0xff]  ;;  %252 = vadd.xlane.f32.xlu0 %v251_v3  ;;  %v254_v10 = vadd.f32 %v810_v6, %v808_v5  ;;  %v269_v17 = vld [vmem:[%s929_s1 + $0x10] sm:$0xff]  ;;  %v268_v18 = vld [vmem:[%s929_s1 + $0x8] sm:$0xff]  ;;  %s398_s28 = sshll.u32 %s242_s26, 4  ;;  %s658_s16 = smov [#allocation5]   ;;  %s878_s28 = int_to_ptr.vmem [resolvable:$true] %s398_s28 }
  0x39   : > { %258 = vadd.xlane.f32.xlu1 %v257_v7  ;;  %v260_v11 = vadd.f32 %v816_v9, %v814_v8  ;;  %v270_v22 = vld [vmem:[%s929_s1 + $0x18] sm:$0xff]  ;;  %v289_v42 = vld [vmem:[%s930_s2] sm:$0x1]  ;;  %v298_v45 = vsub.s32 0, %v297_v41  ;;  %v293_v47 = vld [vmem:[%s931_s3 + $0x8] sm:$0xff]  ;;  %s588_s15 = scalar_lea.vmem %s878_s28, 1024 }
  0x3a   : > { %v292_v48 = vld [vmem:[%s931_s3] sm:$0xff]  ;;  %v295_v50 = vld [vmem:[%s931_s3 + $0x18] sm:$0xff]  ;;  %v294_v51 = vld [vmem:[%s931_s3 + $0x10] sm:$0xff]  ;;  %p589_p11 = scmp.ne.s32.totalorder %s878_s28, %s588_s15  ;;  %s592_s8 = sshll.u32 %s658_s16, 4  ;;  %s593_s8 = int_to_ptr.vmem [resolvable:$false] %s592_s8 }
  0x3b   : > { %v317_v61 = vld [vmem:[%s932_s4 + $0x8] sm:$0xff]  ;;  %v316_v62 = vld [vmem:[%s932_s4] sm:$0xff]  ;;  %s594_s7 = scalar_lea.vmem %s593_s8, 2048  ;;  %p595_p5 = scmp.lt.s32.totalorder %s878_s28, %s593_s8 }
  0x3c   : > { %255 = vadd.xlane.f32.xlu0 %v254_v10  ;;  %p590_p13 = pnand %p589_p11, %p942_p12  ;;  %p596_p7 = scmp.lt.s32.totalorder %s594_s7, %s588_s15 }
  0x3d   : > { %261 = vadd.xlane.f32.xlu1 %v260_v11  ;;  %v319_v11 = vld [vmem:[%s932_s4 + $0x18] sm:$0xff] }
  0x3e   : > { %p591_p4 = pneg %p590_p13  ;;  %p597_p8 = por %p596_p7, %p595_p5 }
  0x40   : > { %p598_p10 = pnand %p597_p8, %p591_p4 }
  0xc1   : > { %v253_v12 = vpop.xlane.xlu0 %252 }
  0xc2   : > { %v263_v13 = vmul.f32 0.00390625, %v253_v12  ;;  %v259_v14 = vpop.xlane.xlu1 %258  ;;  %v318_v12 = vld [vmem:[%s932_s4 + $0x10] sm:$0xff] }
  0xc3   : > { %v265_v16 = vmul.f32 0.00390625, %v259_v14 }
  0xc4   : > { %v271_v20 = vmul.f32 %v267_v15, %v263_v13 }
  0xc5   : > { %v256_v19 = vpop.xlane.xlu0 %255  ;;  %v273_v25 = vmul.f32 %v269_v17, %v265_v16 }
  0xc6   : > { %v264_v21 = vmul.f32 0.00390625, %v256_v19  ;;  %v262_v23 = vpop.xlane.xlu1 %261  ;;  %v276_v28 = vsel %vm275_vm0, %v271_v20, 0.0 }
  0xc7   : > { %v266_v24 = vmul.f32 0.00390625, %v262_v23  ;;  %v279_v31 = vsel %vm275_vm0, %v273_v25, 0.0 }
  0xc8   : > { %v272_v26 = vmul.f32 %v268_v18, %v264_v21 }
  0xc9   : > { %v274_v27 = vmul.f32 %v270_v22, %v266_v24 }
  0xca   : > { %v277_v29 = vsel %vm275_vm0, %v272_v26, 0.0 }
  0xcb   : > { %v278_v30 = vadd.f32 %v277_v29, %v276_v28  ;;  %v281_v32 = vsel %vm275_vm0, %v274_v27, 0.0 }
  0xcd   : > { %v280_v33 = vadd.f32 %v279_v31, %v278_v30 }
  0xcf   : > { %v282_v34 = vadd.f32 %v281_v32, %v280_v33 }
  0xd1   : > { %v283_v35 = vrot.slane %v282_v34, 4 }
  0xd3   : > { %v284_v36 = vadd.f32 %v283_v35, %v282_v34 }
  0xd5   : > { %v285_v37 = vrot.slane %v284_v36, 2 }
  0xd7   : > { %v286_v39 = vadd.f32 %v285_v37, %v284_v36 }
  0xd9   : > { %v287_v40 = vrot.slane %v286_v39, 1 }
  0xdb   : > { %v288_v43 = vadd.f32 %v287_v40, %v286_v39 }
  0xdd   : > { %v290_v44 = vadd.f32 %v289_v42, %v288_v43 }
  0xdf   : > { %v291_v46 = vmax.f32 %v290_v44, 0.0 }
  0xe1   : > { %v299_v49 = vrot.slane %v291_v46, %v298_v45 }
  0xe3   : > { %v301_v52 = vmul.f32 %v299_v49, %v293_v47  ;;  %v300_v53 = vmul.f32 %v299_v49, %v292_v48  ;;  %v303_v56 = vmul.f32 %v299_v49, %v295_v50  ;;  %v302_v57 = vmul.f32 %v299_v49, %v294_v51 }
  0xe5   : > { %v307_v54 = vsel %vm275_vm0, %v301_v52, 0.0  ;;  %v304_v55 = vsel %vm275_vm0, %v300_v53, 0.0  ;;  %v313_v58 = vsel %vm275_vm0, %v303_v56, 0.0  ;;  %v310_v59 = vsel %vm275_vm0, %v302_v57, 0.0 }
  0xe6   : > { %308 = vadd.xlane.f32.xlu1 %v307_v54  ;;  %305 = vadd.xlane.f32.xlu0 %v304_v55 }
  0xea   : > { %314 = vadd.xlane.f32.xlu1 %v313_v58  ;;  %311 = vadd.xlane.f32.xlu0 %v310_v59 }
 0x16f   : > { %v309_v63 = vpop.xlane.xlu1 %308  ;;  %v306_v3 = vpop.xlane.xlu0 %305 }
 0x170   : > { %v321_v7 = vadd.f32 %v317_v61, %v309_v63  ;;  %v320_v10 = vadd.f32 %v316_v62, %v306_v3 }
 0x172   : > { %v481_v13 = vmul.f32 -1.442695, %v321_v7  ;;  %v480_v14 = vmul.f32 -1.442695, %v320_v10 }
 0x173   : > { %v315_v15 = vpop.xlane.xlu1 %314  ;;  %v312_v16 = vpop.xlane.xlu0 %311 }
 0x174   : > { %544 = vpow2.f32 %v481_v13  ;;  %v323_v17 = vadd.f32 %v319_v11, %v315_v15  ;;  %v322_v18 = vadd.f32 %v318_v12, %v312_v16 }
 0x175   : > { %546 = vpow2.f32 %v480_v14 }
 0x176   : > { %v483_v19 = vmul.f32 -1.442695, %v323_v17  ;;  %v482_v20 = vmul.f32 -1.442695, %v322_v18 }
 0x178   : > { %548 = vpow2.f32 %v483_v19 }
 0x179   : > { %550 = vpow2.f32 %v482_v20 }
 0x181   : > { %v545_v21 = vpop.eup %544 }
 0x182   : > { %v547_v22 = vpop.eup %546  ;;  %v337_v23 = vadd.f32 1.0, %v545_v21 }
 0x183   : > { %v336_v24 = vadd.f32 1.0, %v547_v22 }
 0x184   : > { %552 = vrcp.f32 %v337_v23 }
 0x185   : > { %v549_v25 = vpop.eup %548  ;;  %554 = vrcp.f32 %v336_v24 }
 0x186   : > { %v551_v26 = vpop.eup %550  ;;  %v339_v28 = vadd.f32 1.0, %v549_v25 }
 0x187   : > { %v338_v27 = vadd.f32 1.0, %v551_v26 }
 0x189   : > { %556 = vrcp.f32 %v338_v27 }
 0x18a   : > { %558 = vrcp.f32 %v339_v28 }
 0x191   : > { %v553_v29 = vpop.eup %552 }
 0x192   : > { %v555_v30 = vpop.eup %554  ;;  %355 = vperm.xlu1 %543, %v553_v29  }
 0x193   : > { %350 = vperm.xlu0 %542, %v555_v30  }
 0x196   : > { %v557_v31 = vpop.eup %556 }
 0x197   : > { %360 = vperm.xlu1 %543, %v557_v31   ;;  %v559_v32 = vpop.eup %558 }
 0x19b   : > { %365 = vperm.xlu1 %543, %v559_v32  }
 0x20d   : > { %v356_v33 = vpop.permute.xlu1 %355 }
 0x20e   : > { %v370_v34 = vmul.f32 %v356_v33, %v808_v5  ;;  %v371_v35 = vmul.f32 %v356_v33, %v810_v6  ;;  %v351_v36 = vpop.permute.xlu0 %350 }
 0x20f   : > { %v368_v37 = vmul.f32 %v351_v36, %v798_v0  ;;  %v369_v38 = vmul.f32 %v351_v36, %v800_v1 }
 0x210   : > { %378 = vst [vmem:[%s242_s26 + $0x10] sm:$0xff] %v370_v34  ;;  %379 = vst [vmem:[%s242_s26 + $0x18] sm:$0xff] %v371_v35 }
 0x211   : > { %376 = vst [vmem:[%s242_s26] sm:$0xff] %v368_v37  ;;  %377 = vst [vmem:[%s242_s26 + $0x8] sm:$0xff] %v369_v38 }
 0x212   : > { %v361_v39 = vpop.permute.xlu1 %360 }
 0x213   : > { %v372_v40 = vmul.f32 %v361_v39, %v802_v2  ;;  %v373_v5 = vmul.f32 %v361_v39, %v806_v4 }
 0x215   : > { %380 = vst [vmem:[%s242_s26 + $0x20] sm:$0xff] %v372_v40  ;;  %381 = vst [vmem:[%s242_s26 + $0x28] sm:$0xff] %v373_v5 }
 0x216   : > { %v366_v0 = vpop.permute.xlu1 %365 }
 0x217   : > { %v374_v1 = vmul.f32 %v366_v0, %v814_v8  ;;  %v375_v2 = vmul.f32 %v366_v0, %v816_v9 }
 0x219   : > { %382 = vst [vmem:[%s242_s26 + $0x30] sm:$0xff] %v374_v1  ;;  %383 = vst [vmem:[%s242_s26 + $0x38] sm:$0xff] %v375_v2 }
 0x21a   : > { %601 = shalt.err (!%p598_p10)
}
 0x21b   : > { %s602_s9 = scalar_lea.hbm %s883_s14, 1024  ;;  %s606_s13 = scalar_lea.hbm %s933_s5, 2048 }
 0x21c   : > { %p603_p0 = scmp.ne.s32.totalorder %s883_s14, %s602_s9  ;;  %p607_p1 = scmp.lt.s32.totalorder %s883_s14, %s933_s5 }
 0x21d   : > { %p608_p3 = scmp.lt.s32.totalorder %s606_s13, %s602_s9 }
 0x21e   : > { %p604_p2 = pnand %p603_p0, %p942_p12 }
 0x21f   : > { %p609_p6 = por %p608_p3, %p607_p1 }
 0x220   : > { %p605_p9 = pneg %p604_p2 }
 0x222   : > { %p610_p11 = pnand %p609_p6, %p605_p9 }
 0x224   : > { %613 = shalt.err (!%p610_p11)
}
 0x225   : > { %s659_s29 = smov 256   ;;  %s660_s25 = smov 16  }
 0x226   : > { %493 = dma.vmem_to_hbm [thread:$0]  (%p942_p12), %s878_s28, 1024, %s883_s14, %s385_s22, %s659_s29, %s659_s29, %s660_s25  }
 0x227 PF: > { %s413_s12 = sand.u32 1, %s640_s18   ;;  %p943_p13 = scmp.ne.s32.totalorder %s939_s6, 0 }
 0x228   : > { %p944_p4 = scmp.ge.s32.totalorder %s652_s21, 2  ;;  %s414_s15 = scalar_lea.sflag [#allocation4], %s413_s12 }
 0x22a   : > { %p500_p5 = pnand %p944_p4, %p943_p13 }
 0x22c   : > { %p501_p7 = pneg %p500_p5 }
 0x22e   : > { %635 = dma.done.wait (%p501_p7), %s414_s15, 1024  }
 0x22f   : > { %637 = vsyncadd (%p501_p7), %s414_s15, 4294966272  ;;  %p18_p8 = scmp.ge.s32.totalorder %s716_s24, 4   ;;  %s945_s18 = smov %s644_s19 }
 0x230   : > { %s946_s19 = smov %s648_s20  ;;  %s947_s20 = smov %s728_s27 }
 0x231   : > { %s948_s21 = smov %s716_s24  ;;  %20 = sbr.rel (!%p18_p8) target bundleno = 5 (0x5), region = 85 }
 0x236   :  { %419 = vsyncpa [#allocation3], 1 }
 0x237   :  { %421 = vsyncpa [#allocation3 + $0x1], 1 }
 0x238   :  { %422 = vsyncpa [#allocation4], 1 }
 0x239   :  { %424 = vsyncpa [#allocation4 + $0x1], 1 }

</bundles_post_ra>
